<compile_context>
chip_gen: v6e
topology: v6e:2x2x1
jax: 0.10.0
libtpu: 0.0.40
codegen_flags: <defaults>
</compile_context>

<pallas_src>
import functools

import jax
import jax.numpy as jnp
from jax import lax
from jax.experimental import pallas as pl
from jax.experimental.pallas import tpu as pltpu

_LANE = 128


def _round_up(x, m):
    return ((x + m - 1) // m) * m


def _cdiv(a, b):
    return (a + b - 1) // b


def _device_defaults():
    """Generation-aware defaults: (edge_tile, onehot_max_nodes, vmem_cap_bytes)."""
    try:
        kind = jax.devices()[0].device_kind.lower()
    except Exception:  # pragma: no cover - defensive only
        kind = ""
    if "v5" in kind:
        # v5e: ~197 TF/s MXU -> abandon the one-hot gather earlier;
        # 128 MiB VMEM -> bigger edge tiles are cheap.
        return 2048, 256, 96 * 1024 * 1024
    if "v6" in kind:
        return 2048, 512, 96 * 1024 * 1024
    if "7" in kind:
        # v7x: 64 MiB VMEM per TC -> smaller tile, leave compiler headroom.
        return 1024, 512, 48 * 1024 * 1024
    return 1024, 512, 48 * 1024 * 1024


def _choose_tiling(num_edges, edge_tile):
    """Pick (tile, steps): tile % 128 == 0 for multi-step grids, even #steps
    whenever there is enough work, minimal padding (no 2*tile round-up)."""
    e8 = _round_up(max(num_edges, 1), 8)
    if e8 <= _LANE:
        return e8, 1                      # too small to split at 128 granularity
    steps = max(2, _cdiv(e8, edge_tile))  # >=2 steps so both v7x TCs get work
    if steps % 2:
        steps += 1
    tile = _round_up(_cdiv(e8, steps), _LANE)
    steps = _cdiv(e8, tile)
    if steps > 1 and steps % 2:
        steps += 1
    if steps == 1:
        tile = e8
    return tile, steps


# ---------------------------------------------------------------------------
# Kernels (everything transposed: edges live on the lane axis).
# ---------------------------------------------------------------------------

def _edge_score_onehot_kernel(ids_ref, attr_t_ref, pu_t_ref, pv_t_ref,
                              we_t_ref, o_ref):
    """o[:, e] = P_u.T[:, src[e]] + P_v.T[:, dst[e]] + W_e.T_cols @ attr.T[:, e].

    Node tables stay resident in VMEM (constant-index blocks); endpoint rows
    are gathered on-chip with one-hot matmuls (MXU is idle otherwise)."""
    num_nodes = pu_t_ref.shape[1]
    tile = ids_ref.shape[1]
    node_iota = lax.broadcasted_iota(jnp.int32, (num_nodes, tile), 0)
    oh_u = (node_iota == ids_ref[0:1, :]).astype(jnp.float32)   # [N, tile]
    oh_v = (node_iota == ids_ref[1:2, :]).astype(jnp.float32)   # [N, tile]
    acc = jnp.dot(pu_t_ref[...], oh_u, preferred_element_type=jnp.float32)
    acc = acc + jnp.dot(pv_t_ref[...], oh_v, preferred_element_type=jnp.float32)
    acc = acc + jnp.dot(we_t_ref[...], attr_t_ref[...],
                        preferred_element_type=jnp.float32)
    o_ref[...] = acc.astype(o_ref.dtype)


def _edge_score_pregathered_kernel(gu_t_ref, gv_t_ref, attr_t_ref, we_t_ref,
                                   o_ref):
    """Large-graph path: partial scores were gathered in the wrapper (O(E*C))."""
    acc = gu_t_ref[...].astype(jnp.float32) + gv_t_ref[...].astype(jnp.float32)
    acc = acc + jnp.dot(we_t_ref[...], attr_t_ref[...],
                        preferred_element_type=jnp.float32)
    o_ref[...] = acc.astype(o_ref.dtype)


# ---------------------------------------------------------------------------
# Wrapper
# ---------------------------------------------------------------------------

@functools.partial(jax.jit,
                   static_argnames=("edge_tile", "onehot_max_nodes", "vmem_cap"))
def _mlp_predictor_impl(h, edge_attr, src, dst, weight, bias, *,
                        edge_tile, onehot_max_nodes, vmem_cap):
    num_nodes, in_features = h.shape
    num_edges, edge_feats = edge_attr.shape
    out_classes = weight.shape[0]
    out_dtype = h.dtype

    tile, steps = _choose_tiling(num_edges, edge_tile)
    num_padded = tile * steps
    pad = num_padded - num_edges

    # Per-node partial score tables (bias folded into the src table) and the
    # edge-feature weight block; all small, computed once in the wrapper.
    h32 = h.astype(jnp.float32)
    w_u = weight[:, :in_features].astype(jnp.float32)            # [C, F]
    w_v = weight[:, in_features:2 * in_features].astype(jnp.float32)
    w_e_t = weight[:, 2 * in_features:].astype(jnp.float32)      # [C, Fe]
    p_u = h32 @ w_u.T + bias.astype(jnp.float32)[None, :]        # [N, C]
    p_v = h32 @ w_v.T                                            # [N, C]

    # Lane-dense [Fe, E_padded] edge-attr stream.
    attr_t = jnp.pad(edge_attr.astype(jnp.float32), ((0, pad), (0, 0))).T

    use_onehot = num_nodes <= onehot_max_nodes

    if use_onehot:
        # src/dst packed into a single [2, E_padded] int32 stream.
        ids = jnp.stack([src.astype(jnp.int32), dst.astype(jnp.int32)], axis=0)
        ids = jnp.pad(ids, ((0, 0), (0, pad)))          # padded edges -> node 0
        kernel = _edge_score_onehot_kernel
        args = (ids, attr_t, p_u.T, p_v.T, w_e_t)
        in_specs = [
            pl.BlockSpec((2, tile), lambda i: (0, i)),                     # ids
            pl.BlockSpec((edge_feats, tile), lambda i: (0, i)),            # attr^T
            pl.BlockSpec((out_classes, num_nodes), lambda i: (0, 0)),      # P_u^T (resident)
            pl.BlockSpec((out_classes, num_nodes), lambda i: (0, 0)),      # P_v^T (resident)
            pl.BlockSpec((out_classes, edge_feats), lambda i: (0, 0)),     # W_e^T cols
        ]
        est = 4 * (2 * (2 * tile)                              # id stream
                   + 2 * edge_feats * tile                     # attr stream
                   + 2 * out_classes * tile                    # score stream
                   + 2 * (2 * num_nodes * out_classes
                          + out_classes * edge_feats)          # resident tables
                   + 3 * num_nodes * tile                      # iota + one-hots
                   + 3 * out_classes * tile)                   # gathered + acc
    else:
        # Large graphs: gather the tiny [E, C] partial-score rows in XLA
        # (O(E*C), independent of N) and stream them lane-dense.
        gu_t = jnp.pad(jnp.take(p_u, src, axis=0), ((0, pad), (0, 0))).T
        gv_t = jnp.pad(jnp.take(p_v, dst, axis=0), ((0, pad), (0, 0))).T
        kernel = _edge_score_pregathered_kernel
        args = (gu_t, gv_t, attr_t, w_e_t)
        in_specs = [
            pl.BlockSpec((out_classes, tile), lambda i: (0, i)),
            pl.BlockSpec((out_classes, tile), lambda i: (0, i)),
            pl.BlockSpec((edge_feats, tile), lambda i: (0, i)),
            pl.BlockSpec((out_classes, edge_feats), lambda i: (0, 0)),
        ]
        est = 4 * (2 * 2 * out_classes * tile
                   + 2 * edge_feats * tile
                   + 2 * out_classes * tile
                   + 2 * out_classes * edge_feats
                   + 2 * out_classes * tile)

    vmem_limit = int(min(vmem_cap, max(32 * 1024 * 1024, 2 * est)))

    out_t = pl.pallas_call(
        kernel,
        out_shape=jax.ShapeDtypeStruct((out_classes, num_padded), out_dtype),
        grid_spec=pltpu.PrefetchScalarGridSpec(
            num_scalar_prefetch=0,
            grid=(steps,),
            in_specs=in_specs,
            out_specs=pl.BlockSpec((out_classes, tile), lambda i: (0, i)),
        ),
        compiler_params=pltpu.CompilerParams(
            dimension_semantics=("parallel",),
            vmem_limit_bytes=vmem_limit),
    )(*args)

    # Tiny [C, E] -> [E, C] transpose; far cheaper than masked 8/128-lane stores.
    return out_t[:, :num_edges].T


def mlp_predictor_forward(h, edge_attr, src, dst, weight, bias, *,
                          edge_tile=None, onehot_max_nodes=None):
    """Pallas implementation of MLPPredictor.forward.

    h         : [N, in_features]      node features
    edge_attr : [E, edge_feats]       per-edge features
    src, dst  : [E] int               edge endpoints
    weight    : [out_classes, 2*in_features + edge_feats]  (nn.Linear layout)
    bias      : [out_classes]
    returns   : [E, out_classes]      per-edge scores
    """
    d_tile, d_onehot, d_cap = _device_defaults()
    if edge_tile is None:
        edge_tile = d_tile
    if onehot_max_nodes is None:
        onehot_max_nodes = d_onehot
    return _mlp_predictor_impl(h, edge_attr, src, dst, weight, bias,
                               edge_tile=int(edge_tile),
                               onehot_max_nodes=int(onehot_max_nodes),
                               vmem_cap=int(d_cap))


def reference_forward(h, edge_attr, src, dst, weight, bias):
    x = jnp.concatenate([h[src], h[dst], edge_attr], axis=1)
    return x @ weight.T + bias


if __name__ == "__main__":
    # Small synthetic graph, deterministic params (same init law as nn.Linear).
    # TODO(synk): DGL graph bookkeeping (local_scope / apply_edges) has no Pallas
    # equivalent; edges are represented directly as (src, dst) index arrays.
    num_nodes = 128
    num_edges = 300          # deliberately not a multiple of the tile
    in_features = 16
    edge_feats = 8
    out_classes = 8

    key = jax.random.PRNGKey(0)
    k_h, k_attr, k_src, k_dst, k_w, k_b = jax.random.split(key, 6)

    h = jax.random.normal(k_h, (num_nodes, in_features), dtype=jnp.float32)
    edge_attr = jax.random.normal(k_attr, (num_edges, edge_feats),
                                  dtype=jnp.float32)
    src = jax.random.randint(k_src, (num_edges,), 0, num_nodes, dtype=jnp.int32)
    dst = jax.random.randint(k_dst, (num_edges,), 0, num_nodes, dtype=jnp.int32)

    fan_in = 2 * in_features + edge_feats
    bound = 1.0 / (fan_in ** 0.5)
    weight = jax.random.uniform(k_w, (out_classes, fan_in), dtype=jnp.float32,
                                minval=-bound, maxval=bound)
    bias = jax.random.uniform(k_b, (out_classes,), dtype=jnp.float32,
                              minval=-bound, maxval=bound)

    ref = reference_forward(h, edge_attr, src, dst, weight, bias)

    # Small-graph path: resident partial-score tables + on-chip one-hot gather.
    score = mlp_predictor_forward(h, edge_attr, src, dst, weight, bias)
    score = jax.block_until_ready(score)
    assert score.shape == (num_edges, out_classes)
    assert jnp.allclose(score, ref, atol=1e-4, rtol=1e-4), \
        float(jnp.max(jnp.abs(score - ref)))

    # Large-graph path (forced): wrapper-side O(E*C) gather, streamed lane-dense.
    score_big = mlp_predictor_forward(h, edge_attr, src, dst, weight, bias,
                                      onehot_max_nodes=0)
    score_big = jax.block_until_ready(score_big)
    assert jnp.allclose(score_big, ref, atol=1e-4, rtol=1e-4), \
        float(jnp.max(jnp.abs(score_big - ref)))

    print("KERNEL_OK")
</pallas_src>

<mosaic_0001>
module attributes {stable_mosaic.version = 11 : i64} {
  func.func @_edge_score_onehot_kernel(%arg0: i32, %arg1: memref<2x256xi32, #tpu.memory_space<vmem>>, %arg2: memref<8x256xf32, #tpu.memory_space<vmem>>, %arg3: memref<8x128xf32, #tpu.memory_space<vmem>>, %arg4: memref<8x128xf32, #tpu.memory_space<vmem>>, %arg5: memref<8x8xf32, #tpu.memory_space<vmem>>, %arg6: memref<8x256xf32, #tpu.memory_space<vmem>>) attributes {dimension_semantics = [#tpu.dimension_semantics<parallel>], iteration_bounds = array<i64: 2>, scalar_prefetch = 0 : i64, scratch_operands = 0 : i64, tpu.core_type = #tpu.core_type<tc>, window_params = [{transform_indices = @transform_0, window_bounds = array<i64: 2, 256>}, {transform_indices = @transform_1, window_bounds = array<i64: 8, 256>}, {pipeline_mode = #tpu.pipeline_mode<synchronous>, transform_indices = @transform_2, window_bounds = array<i64: 8, 128>}, {pipeline_mode = #tpu.pipeline_mode<synchronous>, transform_indices = @transform_3, window_bounds = array<i64: 8, 128>}, {pipeline_mode = #tpu.pipeline_mode<synchronous>, transform_indices = @transform_4, window_bounds = array<i64: 8, 8>}, {transform_indices = @transform_5, window_bounds = array<i64: 8, 256>}]} {
    %0 = tpu.iota {dimensions = array<i32: 0>} : vector<128x256xi32>
    %c0 = arith.constant 0 : index
    %c0_0 = arith.constant 0 : index
    %1 = vector.load %arg1[%c0, %c0_0] : memref<2x256xi32, #tpu.memory_space<vmem>>, vector<1x256xi32>
    %2 = vector.broadcast %1 : vector<1x256xi32> to vector<128x256xi32>
    %3 = arith.cmpi eq, %0, %2 : vector<128x256xi32>
    %4 = arith.extui %3 : vector<128x256xi1> to vector<128x256xi32>
    %5 = arith.sitofp %4 : vector<128x256xi32> to vector<128x256xf32>
    %c1 = arith.constant 1 : index
    %c0_1 = arith.constant 0 : index
    %6 = vector.load %arg1[%c1, %c0_1] : memref<2x256xi32, #tpu.memory_space<vmem>>, vector<1x256xi32>
    %7 = vector.broadcast %6 : vector<1x256xi32> to vector<128x256xi32>
    %8 = arith.cmpi eq, %0, %7 : vector<128x256xi32>
    %9 = arith.extui %8 : vector<128x256xi1> to vector<128x256xi32>
    %10 = arith.sitofp %9 : vector<128x256xi32> to vector<128x256xf32>
    %c0_2 = arith.constant 0 : index
    %c0_3 = arith.constant 0 : index
    %11 = vector.load %arg3[%c0_2, %c0_3] : memref<8x128xf32, #tpu.memory_space<vmem>>, vector<8x128xf32>
    %cst = arith.constant dense<0.000000e+00> : vector<8x256xf32>
    %12 = tpu.matmul %11, %5, %cst {dimension_numbers = #tpu.dot_dimension_numbers<[1], [0], [0], [1], [0, 0, 1, 1], [], []>} : vector<8x128xf32>, vector<128x256xf32>, vector<8x256xf32> -> vector<8x256xf32>
    %c0_4 = arith.constant 0 : index
    %c0_5 = arith.constant 0 : index
    %13 = vector.load %arg4[%c0_4, %c0_5] : memref<8x128xf32, #tpu.memory_space<vmem>>, vector<8x128xf32>
    %cst_6 = arith.constant dense<0.000000e+00> : vector<8x256xf32>
    %14 = tpu.matmul %13, %10, %cst_6 {dimension_numbers = #tpu.dot_dimension_numbers<[1], [0], [0], [1], [0, 0, 1, 1], [], []>} : vector<8x128xf32>, vector<128x256xf32>, vector<8x256xf32> -> vector<8x256xf32>
    %15 = arith.addf %12, %14 : vector<8x256xf32>
    %c0_7 = arith.constant 0 : index
    %c0_8 = arith.constant 0 : index
    %16 = vector.load %arg5[%c0_7, %c0_8] : memref<8x8xf32, #tpu.memory_space<vmem>>, vector<8x8xf32>
    %c0_9 = arith.constant 0 : index
    %c0_10 = arith.constant 0 : index
    %17 = vector.load %arg2[%c0_9, %c0_10] : memref<8x256xf32, #tpu.memory_space<vmem>>, vector<8x256xf32>
    %cst_11 = arith.constant dense<0.000000e+00> : vector<8x256xf32>
    %18 = tpu.matmul %16, %17, %cst_11 {dimension_numbers = #tpu.dot_dimension_numbers<[1], [0], [0], [1], [0, 0, 1, 1], [], []>} : vector<8x8xf32>, vector<8x256xf32>, vector<8x256xf32> -> vector<8x256xf32>
    %19 = arith.addf %15, %18 : vector<8x256xf32>
    %c0_12 = arith.constant 0 : index
    %c0_13 = arith.constant 0 : index
    %20 = vector.load %arg6[%c0_12, %c0_13] : memref<8x256xf32, #tpu.memory_space<vmem>>, vector<8x256xf32>
    tpu.vector_store %arg6[%c0_12, %c0_13], %19 {strides = array<i32>} : memref<8x256xf32, #tpu.memory_space<vmem>>, vector<8x256xf32>,
    return
  }
  func.func @transform_0(%arg0: i32) -> (i32, i32) {
    %c0_i32 = arith.constant 0 : i32
    %c0_i32_0 = arith.constant 0 : i32
    return %c0_i32, %arg0 : i32, i32
  }
  func.func @transform_1(%arg0: i32) -> (i32, i32) {
    %c0_i32 = arith.constant 0 : i32
    %c0_i32_0 = arith.constant 0 : i32
    return %c0_i32, %arg0 : i32, i32
  }
  func.func @transform_2(%arg0: i32) -> (i32, i32) {
    %c0_i32 = arith.constant 0 : i32
    %c0_i32_0 = arith.constant 0 : i32
    %c0_i32_1 = arith.constant 0 : i32
    return %c0_i32, %c0_i32_0 : i32, i32
  }
  func.func @transform_3(%arg0: i32) -> (i32, i32) {
    %c0_i32 = arith.constant 0 : i32
    %c0_i32_0 = arith.constant 0 : i32
    %c0_i32_1 = arith.constant 0 : i32
    return %c0_i32, %c0_i32_0 : i32, i32
  }
  func.func @transform_4(%arg0: i32) -> (i32, i32) {
    %c0_i32 = arith.constant 0 : i32
    %c0_i32_0 = arith.constant 0 : i32
    %c0_i32_1 = arith.constant 0 : i32
    return %c0_i32, %c0_i32_0 : i32, i32
  }
  func.func @transform_5(%arg0: i32) -> (i32, i32) {
    %c0_i32 = arith.constant 0 : i32
    %c0_i32_0 = arith.constant 0 : i32
    return %c0_i32, %arg0 : i32, i32
  }
}

</mosaic_0001>

<bundles_post_ra>
// kernel: _mlp_predictor_impl.1
= control target key start
LH: loop header
LB: loop body
LE: loop exit
PB: predicated region body
PF: predicated region fallthrough
CT: control target
= control target key end

     0   :  { %s965_s18 = smov 0   ;;  %s1164_s0 = inlined_call_operand.vmem [shape: s32[2,512], index: 0, kind: input, shape index: {}]   ;;  %s1165_s1 = inlined_call_operand.vmem [shape: f32[8,512], index: 1, kind: input, shape index: {}]   ;;  %s1166_s2 = inlined_call_operand.vmem [shape: f32[8,128], index: 2, kind: input, shape index: {}]   ;;  %s1167_s3 = inlined_call_operand.vmem [shape: f32[8,128], index: 3, kind: input, shape index: {}]   ;;  %s1168_s4 = inlined_call_operand.vmem [shape: f32[8,8], index: 4, kind: input, shape index: {}]   ;;  %s1169_s5 = inlined_call_operand.vmem [shape: f32[8,512], index: 5, kind: output, shape index: {}]  }
   0x1 LB: > { %s772_s19 = sadd.s32 4294967295, %s931_s18   ;;  %p776_p0 = scmp.ge.s32.totalorder %s931_s18, 1  ;;  %s931_s18 = sphi %s965_s18, %s15_s18  }
   0x2   : > { %p199_p1 = scmp.lt.s32.totalorder %s931_s18, 3 }
   0x4   : > { %p200_p2 = pnand %p776_p0, %p199_p1 }
   0x5   : > { %s777_s20 = sshll.u32 (!%p200_p2), %s772_s19, 1 }
   0x6   : > { %203 = sbr.rel (%p200_p2) target bundleno = 254 (0xfe), region = 40  ;;  %p233_p3 = scmp.lt.s32.totalorder (!%p200_p2), %s777_s20, 3 }
   0xb   : > { %v250_v0 = vlaneseq  ;;  %v933_v1 = vmov 0.0   ;;  %s1171_s20 = smov (!%p233_p3, %s777_s20), 3  ;;  %v934_v15 = vmov 1.0   ;;  %v479_v27 = vld [vmem:[%s1167_s3] sm:$0xff] }
   0xc   : > { %544 = vmatprep.mubr.f32.mxu0 %v933_v1  ;;  %615 = vmatprep.mubr.f32.mxu1 %v933_v1  ;;  %s778_s21 = sshll.u32 %s1171_s20, 1  ;;  %s780_s25 = sshll.u32 %s1171_s20, 3  ;;  %v478_v28 = vld [vmem:[%s1166_s2] sm:$0xff] }
   0xd   : > { %v975_v2 = vshrl.u32 %v250_v0, 7  ;;  %s236_s24 = scalar_lea.vmem %s1164_s0, %s778_s21  ;;  %s242_s28 = scalar_lea.vmem %s1165_s1, %s780_s25  ;;  %v622_v31 = vld [vmem:[%s1168_s4] sm:$0xff] }
   0xe   : > { %v815_v8 = vld [vmem:[%s236_s24 + $0x1] ss:$2 sm:$0x3]  ;;  %v267_v9 = vld [vmem:[%s236_s24] ss:$2 sm:$0x3]  ;;  %s248_s12 = scalar_lea.vmem %s1169_s5, %s780_s25 }
   0xf   : > { %v274_v3 = vsub.s32 1, %v975_v2  ;;  %v270_v4 = vsub.s32 0, %v975_v2  ;;  %v266_v5 = vadd.s32 120, %v975_v2  ;;  %v265_v6 = vadd.s32 112, %v975_v2  ;;  %v624_v29 = vld [vmem:[%s242_s28 + $0x8] sm:$0xff]  ;;  %v623_v30 = vld [vmem:[%s242_s28] sm:$0xff] }
  0x10   : > { %v264_v7 = vadd.s32 104, %v975_v2  ;;  %v263_v14 = vadd.s32 96, %v975_v2  ;;  %v262_v16 = vadd.s32 88, %v975_v2  ;;  %v261_v17 = vadd.s32 80, %v975_v2 }
  0x11   : > { %v988_v10 = vrot.slane %v815_v8, %v274_v3  ;;  %v990_v11 = vrot.slane %v267_v9, %v274_v3  ;;  %v992_v12 = vrot.slane %v815_v8, %v270_v4  ;;  %v994_v13 = vrot.slane %v267_v9, %v270_v4 }
  0x12   : > { %v260_v18 = vadd.s32 72, %v975_v2  ;;  %v259_v19 = vadd.s32 64, %v975_v2  ;;  %v258_v20 = vadd.s32 56, %v975_v2  ;;  %v257_v21 = vadd.s32 48, %v975_v2 }
  0x13   : > { %vm413_vm0 = vcmp.eq.s32.totalorder %v266_v5, %v988_v10  ;;  %vm307_vm1 = vcmp.eq.s32.totalorder %v266_v5, %v990_v11  ;;  %vm412_vm2 = vcmp.eq.s32.totalorder %v266_v5, %v992_v12  ;;  %vm306_vm3 = vcmp.eq.s32.totalorder %v266_v5, %v994_v13 }
  0x14   : > { %848 = vmatprep.subr.msk.mxu0 %vm413_vm0, %v934_v15  ;;  %880 = vmatprep.subr.msk.mxu1 %vm307_vm1, %v934_v15  ;;  %vm411_vm4 = vcmp.eq.s32.totalorder %v265_v6, %v988_v10  ;;  %vm305_vm5 = vcmp.eq.s32.totalorder %v265_v6, %v990_v11  ;;  %vm410_vm6 = vcmp.eq.s32.totalorder %v265_v6, %v992_v12  ;;  %v256_v22 = vadd.s32 40, %v975_v2 }
  0x15   : > { %849 = vmatpush1.msk.msra.mxu0 %vm412_vm2, %v934_v15  ;;  %881 = vmatpush1.msk.msra.mxu1 %vm306_vm3, %v934_v15  ;;  %vm304_vm7 = vcmp.eq.s32.totalorder %v265_v6, %v994_v13  ;;  %vm409_vm8 = vcmp.eq.s32.totalorder %v264_v7, %v988_v10  ;;  %vm303_vm9 = vcmp.eq.s32.totalorder %v264_v7, %v990_v11  ;;  %v255_v23 = vadd.s32 32, %v975_v2 }
  0x16   : > { %850 = vmatprep.subr.msk.mxu0 %vm411_vm4, %v934_v15  ;;  %882 = vmatprep.subr.msk.mxu1 %vm305_vm5, %v934_v15  ;;  %vm408_vm10 = vcmp.eq.s32.totalorder %v264_v7, %v992_v12  ;;  %vm302_vm11 = vcmp.eq.s32.totalorder %v264_v7, %v994_v13  ;;  %vm407_vm12 = vcmp.eq.s32.totalorder %v263_v14, %v988_v10  ;;  %v254_v24 = vadd.s32 24, %v975_v2 }
  0x17   : > { %851 = vmatpush1.msk.msra.mxu0 %vm410_vm6, %v934_v15  ;;  %883 = vmatpush1.msk.msra.mxu1 %vm304_vm7, %v934_v15  ;;  %vm301_vm13 = vcmp.eq.s32.totalorder %v263_v14, %v990_v11  ;;  %vm406_vm14 = vcmp.eq.s32.totalorder %v263_v14, %v992_v12  ;;  %vm300_vm15 = vcmp.eq.s32.totalorder %v263_v14, %v994_v13  ;;  %v253_v25 = vadd.s32 16, %v975_v2 }
  0x18   : > { %852 = vmatprep.subr.msk.mxu0 %vm409_vm8, %v934_v15  ;;  %884 = vmatprep.subr.msk.mxu1 %vm303_vm9, %v934_v15  ;;  %vm405_vm0 = vcmp.eq.s32.totalorder %v262_v16, %v988_v10  ;;  %vm299_vm1 = vcmp.eq.s32.totalorder %v262_v16, %v990_v11  ;;  %vm404_vm2 = vcmp.eq.s32.totalorder %v262_v16, %v992_v12  ;;  %v252_v26 = vadd.s32 8, %v975_v2 }
  0x19   : > { %853 = vmatpush1.msk.msra.mxu0 %vm408_vm10, %v934_v15  ;;  %885 = vmatpush1.msk.msra.mxu1 %vm302_vm11, %v934_v15  ;;  %vm298_vm3 = vcmp.eq.s32.totalorder %v262_v16, %v994_v13  ;;  %vm403_vm4 = vcmp.eq.s32.totalorder %v261_v17, %v988_v10  ;;  %vm297_vm5 = vcmp.eq.s32.totalorder %v261_v17, %v990_v11 }
  0x1a   : > { %854 = vmatprep.subr.msk.mxu0 %vm407_vm12, %v934_v15  ;;  %886 = vmatprep.subr.msk.mxu1 %vm301_vm13, %v934_v15  ;;  %vm402_vm6 = vcmp.eq.s32.totalorder %v261_v17, %v992_v12  ;;  %vm296_vm7 = vcmp.eq.s32.totalorder %v261_v17, %v994_v13  ;;  %vm401_vm8 = vcmp.eq.s32.totalorder %v260_v18, %v988_v10 }
  0x1b   : > { %855 = vmatpush1.msk.msra.mxu0 %vm406_vm14, %v934_v15  ;;  %887 = vmatpush1.msk.msra.mxu1 %vm300_vm15, %v934_v15  ;;  %vm295_vm9 = vcmp.eq.s32.totalorder %v260_v18, %v990_v11  ;;  %vm400_vm10 = vcmp.eq.s32.totalorder %v260_v18, %v992_v12  ;;  %vm294_vm11 = vcmp.eq.s32.totalorder %v260_v18, %v994_v13 }
  0x1c   : > { %856 = vmatprep.subr.msk.mxu0 %vm405_vm0, %v934_v15  ;;  %888 = vmatprep.subr.msk.mxu1 %vm299_vm1, %v934_v15  ;;  %vm399_vm12 = vcmp.eq.s32.totalorder %v259_v19, %v988_v10  ;;  %vm293_vm13 = vcmp.eq.s32.totalorder %v259_v19, %v990_v11  ;;  %vm398_vm14 = vcmp.eq.s32.totalorder %v259_v19, %v992_v12 }
  0x1d   : > { %857 = vmatpush1.msk.msra.mxu0 %vm404_vm2, %v934_v15  ;;  %889 = vmatpush1.msk.msra.mxu1 %vm298_vm3, %v934_v15  ;;  %vm292_vm15 = vcmp.eq.s32.totalorder %v259_v19, %v994_v13  ;;  %vm397_vm0 = vcmp.eq.s32.totalorder %v258_v20, %v988_v10  ;;  %vm291_vm1 = vcmp.eq.s32.totalorder %v258_v20, %v990_v11 }
  0x1e   : > { %858 = vmatprep.subr.msk.mxu0 %vm403_vm4, %v934_v15  ;;  %890 = vmatprep.subr.msk.mxu1 %vm297_vm5, %v934_v15  ;;  %vm396_vm2 = vcmp.eq.s32.totalorder %v258_v20, %v992_v12  ;;  %vm290_vm3 = vcmp.eq.s32.totalorder %v258_v20, %v994_v13  ;;  %vm395_vm4 = vcmp.eq.s32.totalorder %v257_v21, %v988_v10 }
  0x1f   : > { %859 = vmatpush1.msk.msra.mxu0 %vm402_vm6, %v934_v15  ;;  %891 = vmatpush1.msk.msra.mxu1 %vm296_vm7, %v934_v15  ;;  %vm289_vm5 = vcmp.eq.s32.totalorder %v257_v21, %v990_v11  ;;  %vm394_vm6 = vcmp.eq.s32.totalorder %v257_v21, %v992_v12  ;;  %vm288_vm7 = vcmp.eq.s32.totalorder %v257_v21, %v994_v13 }
  0x20   : > { %860 = vmatprep.subr.msk.mxu0 %vm401_vm8, %v934_v15  ;;  %892 = vmatprep.subr.msk.mxu1 %vm295_vm9, %v934_v15  ;;  %vm393_vm8 = vcmp.eq.s32.totalorder %v256_v22, %v988_v10  ;;  %vm287_vm9 = vcmp.eq.s32.totalorder %v256_v22, %v990_v11 }
  0x21   : > { %861 = vmatpush1.msk.msra.mxu0 %vm400_vm10, %v934_v15  ;;  %893 = vmatpush1.msk.msra.mxu1 %vm294_vm11, %v934_v15  ;;  %vm392_vm10 = vcmp.eq.s32.totalorder %v256_v22, %v992_v12  ;;  %vm286_vm11 = vcmp.eq.s32.totalorder %v256_v22, %v994_v13 }
  0x22   : > { %862 = vmatprep.subr.msk.mxu0 %vm399_vm12, %v934_v15  ;;  %894 = vmatprep.subr.msk.mxu1 %vm293_vm13, %v934_v15  ;;  %vm391_vm12 = vcmp.eq.s32.totalorder %v255_v23, %v988_v10  ;;  %vm285_vm13 = vcmp.eq.s32.totalorder %v255_v23, %v990_v11 }
  0x23   : > { %863 = vmatpush1.msk.msra.mxu0 %vm398_vm14, %v934_v15  ;;  %895 = vmatpush1.msk.msra.mxu1 %vm292_vm15, %v934_v15  ;;  %vm390_vm14 = vcmp.eq.s32.totalorder %v255_v23, %v992_v12  ;;  %vm284_vm15 = vcmp.eq.s32.totalorder %v255_v23, %v994_v13 }
  0x24   : > { %864 = vmatprep.subr.msk.mxu0 %vm397_vm0, %v934_v15  ;;  %896 = vmatprep.subr.msk.mxu1 %vm291_vm1, %v934_v15  ;;  %vm389_vm0 = vcmp.eq.s32.totalorder %v254_v24, %v988_v10  ;;  %vm283_vm1 = vcmp.eq.s32.totalorder %v254_v24, %v990_v11 }
  0x25   : > { %865 = vmatpush1.msk.msra.mxu0 %vm396_vm2, %v934_v15  ;;  %897 = vmatpush1.msk.msra.mxu1 %vm290_vm3, %v934_v15  ;;  %vm388_vm2 = vcmp.eq.s32.totalorder %v254_v24, %v992_v12  ;;  %vm282_vm3 = vcmp.eq.s32.totalorder %v254_v24, %v994_v13 }
  0x26   : > { %866 = vmatprep.subr.msk.mxu0 %vm395_vm4, %v934_v15  ;;  %898 = vmatprep.subr.msk.mxu1 %vm289_vm5, %v934_v15  ;;  %vm387_vm4 = vcmp.eq.s32.totalorder %v253_v25, %v988_v10  ;;  %vm281_vm5 = vcmp.eq.s32.totalorder %v253_v25, %v990_v11 }
  0x27   : > { %867 = vmatpush1.msk.msra.mxu0 %vm394_vm6, %v934_v15  ;;  %899 = vmatpush1.msk.msra.mxu1 %vm288_vm7, %v934_v15  ;;  %vm386_vm6 = vcmp.eq.s32.totalorder %v253_v25, %v992_v12  ;;  %vm280_vm7 = vcmp.eq.s32.totalorder %v253_v25, %v994_v13 }
  0x28   : > { %868 = vmatprep.subr.msk.mxu0 %vm393_vm8, %v934_v15  ;;  %900 = vmatprep.subr.msk.mxu1 %vm287_vm9, %v934_v15  ;;  %vm385_vm8 = vcmp.eq.s32.totalorder %v252_v26, %v988_v10  ;;  %vm279_vm9 = vcmp.eq.s32.totalorder %v252_v26, %v990_v11 }
  0x29   : > { %869 = vmatpush1.msk.msra.mxu0 %vm392_vm10, %v934_v15  ;;  %901 = vmatpush1.msk.msra.mxu1 %vm286_vm11, %v934_v15  ;;  %vm384_vm10 = vcmp.eq.s32.totalorder %v252_v26, %v992_v12  ;;  %vm278_vm11 = vcmp.eq.s32.totalorder %v252_v26, %v994_v13 }
  0x2a   : > { %870 = vmatprep.subr.msk.mxu0 %vm391_vm12, %v934_v15  ;;  %902 = vmatprep.subr.msk.mxu1 %vm285_vm13, %v934_v15  ;;  %vm383_vm12 = vcmp.eq.s32.totalorder %v975_v2, %v988_v10  ;;  %vm277_vm13 = vcmp.eq.s32.totalorder %v975_v2, %v990_v11 }
  0x2b   : > { %871 = vmatpush1.msk.msra.mxu0 %vm390_vm14, %v934_v15  ;;  %903 = vmatpush1.msk.msra.mxu1 %vm284_vm15, %v934_v15  ;;  %vm382_vm14 = vcmp.eq.s32.totalorder %v975_v2, %v992_v12  ;;  %vm276_vm15 = vcmp.eq.s32.totalorder %v975_v2, %v994_v13 }
  0x2c   : > { %872 = vmatprep.subr.msk.mxu0 %vm389_vm0, %v934_v15  ;;  %904 = vmatprep.subr.msk.mxu1 %vm283_vm1, %v934_v15  ;;  %vm625_vm0 = vcmask 64512  }
  0x2d   : > { %873 = vmatpush1.msk.msra.mxu0 %vm388_vm2, %v934_v15  ;;  %905 = vmatpush1.msk.msra.mxu1 %vm282_vm3, %v934_v15 }
  0x2e   : > { %874 = vmatprep.subr.msk.mxu0 %vm387_vm4, %v934_v15  ;;  %906 = vmatprep.subr.msk.mxu1 %vm281_vm5, %v934_v15 }
  0x2f   : > { %875 = vmatpush1.msk.msra.mxu0 %vm386_vm6, %v934_v15  ;;  %907 = vmatpush1.msk.msra.mxu1 %vm280_vm7, %v934_v15 }
  0x30   : > { %876 = vmatprep.subr.msk.mxu0 %vm385_vm8, %v934_v15  ;;  %908 = vmatprep.subr.msk.mxu1 %vm279_vm9, %v934_v15 }
  0x31   : > { %877 = vmatpush1.msk.msra.mxu0 %vm384_vm10, %v934_v15  ;;  %909 = vmatpush1.msk.msra.mxu1 %vm278_vm11, %v934_v15 }
  0x32   : > { %878 = vmatprep.subr.msk.mxu0 %vm383_vm12, %v934_v15  ;;  %910 = vmatprep.subr.msk.mxu1 %vm277_vm13, %v934_v15 }
  0x33   : > { %879 = vmatpush1.msk.msra.mxu0 %vm382_vm14, %v934_v15  ;;  %911 = vmatpush1.msk.msra.mxu1 %vm276_vm15, %v934_v15 }
  0x34   : > { %545 = vmatmul.mubr.f32.vlgmr.msra.gmra.mxu0 %v479_v27  ;;  %616 = vmatmul.mubr.f32.vlgmr.msra.gmra.mxu1 %v478_v28 }
  0x35   : > { %659 = vmatprep.subr.mxu0 %v624_v29  ;;  %693 = vmatprep.mubr.f32.mxu0 %v933_v1 }
  0x36   : > { %660 = vmatpush1.msra.mxu0 %v623_v30 }
  0x38   : > { %912 = vmatmul.mubr.msk.f32.vlgmr.msra.gmra.mxu0 %vm625_vm0, %v622_v31 }
  0xf4   : > { %v546_v32 = vpop.f32.mrf.mxu0  ;;  %v617_v33 = vpop.f32.mrf.mxu1 }
  0xf5   : > { %v618_v36 = vadd.f32 %v617_v33, %v546_v32 }
  0xf6   : > { %v548_v34 = vpop.f32.mrf.mxu0  ;;  %v619_v35 = vpop.f32.mrf.mxu1 }
  0xf7   : > { %v620_v38 = vadd.f32 %v619_v35, %v548_v34 }
  0xf8   : > { %v695_v37 = vpop.f32.mrf.mxu0 }
  0xf9   : > { %v700_v39 = vadd.f32 %v695_v37, %v618_v36 }
  0xfa   : > { %v697_v40 = vpop.f32.mrf.mxu0 }
  0xfb   : > { %702 = vst [vmem:[%s248_s12] sm:$0xff] %v700_v39  ;;  %v701_v41 = vadd.f32 %v697_v40, %v620_v38 }
  0xfd   : > { %703 = vst [vmem:[%s248_s12 + $0x8] sm:$0xff] %v701_v41 }
  0xfe PF: > { %s15_s18 = sadd.s32 1, %s931_s18  }
  0xff   : > { %p12_p4 = scmp.ge.s32.totalorder %s15_s18, 4  }
 0x101   :  { %14 = sbr.rel (!%p12_p4) target bundleno = 1 (0x1), region = 74 }

</bundles_post_ra>
